<compile_context>
chip_gen: v6e
topology: v6e:2x2x1
jax: 0.10.0
libtpu: 0.0.40
codegen_flags: <defaults>
</compile_context>

<pallas_src>
import functools

import jax
import jax.numpy as jnp
import numpy as np
from jax.experimental import pallas as pl
from jax.experimental.pallas import tpu as pltpu

NEG_SLOPE = 0.2
NEG_INF = -1e30


# ---------------------------------------------------------------------------
# in-kernel: one GAT layer applied to BOTH branches at once
# ---------------------------------------------------------------------------
def _edge_softmax(a_dst, a_src_row, mask_add, negative_slope):
    s = a_dst + a_src_row                                  # [N_dst, N_src]
    s = jnp.where(s >= 0, s, negative_slope * s)           # LeakyReLU (f32 VPU)
    s = s + mask_add                                       # additive 0 / NEG_INF mask (one add)
    m = jnp.max(s, axis=-1, keepdims=True)
    p = jnp.exp(s - m)                                     # masked entries underflow to 0
    # self-loops guarantee >=1 edge per row; a fully-masked row would silently become a
    # uniform distribution here instead of NaN-ing like the reference.
    denom = jnp.maximum(jnp.sum(p, axis=-1, keepdims=True), 1e-30)
    return p / denom                                       # exact division ([N,1] denom)


def _dual_gat_layer(state, mask_add, w, att_pack, fout, negative_slope, apply_relu,
                    mxu_dtype):
    """state:    [N, Kin]        (layer 0: x; layer 1: [x_base | x_lora])
       w:        [Kin, 2*Fout]   (layer 0: [W | A@B]; layer 1: block-diag(W, A@B))
       att_pack: [8, 2*Fout]     rows: [att_src_b|0], [0|att_src_l],
                                       [att_dst_b|0], [0|att_dst_l],
                                       [bias_b|bias_l], 0, 0, 0
       returns:  [N, 2*Fout]     = [out_base | out_lora]
    """
    n = state.shape[0]
    f2 = 2 * fout

    # one MXU matmul produces the transformed features of both branches (f32 accumulate)
    feat = jnp.dot(state.astype(mxu_dtype), w.astype(mxu_dtype),
                   preferred_element_type=jnp.float32)                      # [N, 2*Fout]
    feat_m = feat.astype(mxu_dtype)

    # per-source projections: tiny 2-row matmul landing lane-major [2, N].
    # NOTE(perf review): if the MLIR dump ever shows Mosaic transposing `feat` (the large
    # operand) here, switch to jnp.transpose(feat @ att_pack[0:2].T) so only a [N, 2]
    # transpose goes through the XLU.  At N <= 128 either form is noise.
    a_src = jnp.einsum("rf,nf->rn", att_pack[0:2, :].astype(mxu_dtype), feat_m,
                       preferred_element_type=jnp.float32)                  # [2, N]
    a_src_b = a_src[0:1, :]
    a_src_l = a_src[1:2, :]

    # per-destination projections: VPU mul + lane reduce in f32 (keeps the MXU free)
    a_dst_b = jnp.sum(feat * att_pack[2:3, :], axis=-1, keepdims=True)      # [N, 1]
    a_dst_l = jnp.sum(feat * att_pack[3:4, :], axis=-1, keepdims=True)

    attn_b = _edge_softmax(a_dst_b, a_src_b, mask_add, negative_slope)
    attn_l = _edge_softmax(a_dst_l, a_src_l, mask_add, negative_slope)

    if f2 <= 128:
        # both halves fit in one 128-lane MXU tile: aggregate against the full slab and
        # lane-select -- no sub-128-lane relayouts, select is free.
        agg_b = jnp.dot(attn_b.astype(mxu_dtype), feat_m,
                        preferred_element_type=jnp.float32)                 # [N, 2*Fout]
        agg_l = jnp.dot(attn_l.astype(mxu_dtype), feat_m,
                        preferred_element_type=jnp.float32)
        lane = jax.lax.broadcasted_iota(jnp.int32, (n, f2), 1)
        out = jnp.where(lane < fout, agg_b, agg_l)
    else:
        # beyond one lane tile the full-slab trick would double the MXU passes:
        # aggregate each branch against its own half of the feature slab.
        agg_b = jnp.dot(attn_b.astype(mxu_dtype), feat_m[:, :fout],
                        preferred_element_type=jnp.float32)
        agg_l = jnp.dot(attn_l.astype(mxu_dtype), feat_m[:, fout:],
                        preferred_element_type=jnp.float32)
        out = jnp.concatenate([agg_b, agg_l], axis=-1)

    out = out + att_pack[4:5, :]                                            # + [bias_b|bias_l]
    if apply_relu:
        out = jnp.maximum(out, 0.0)
    return out


# ---------------------------------------------------------------------------
# fused forward kernel: 2 layers, both branches, final add
# ---------------------------------------------------------------------------
def gnn_lora_kernel(data_ref, p0_ref, p1_ref, o_ref, *,
                    fin, fouts, w0_rows, w1_rows, negative_slope, out_pad, mxu_dtype):
    x = data_ref[:, :fin]                          # [N, Fin]
    mask_add = data_ref[:, fin:]                   # [N, N] additive 0 / NEG_INF mask

    w0 = p0_ref[:w0_rows, :]                       # [Fin, 2*Fout0]   = [W0 | A0@B0]
    att0 = p0_ref[w0_rows:w0_rows + 8, :]          # [8, 2*Fout0]
    w1 = p1_ref[:w1_rows, :]                       # [2*Fout0, 2*Fout1] block-diag(W1, A1@B1)
    att1 = p1_ref[w1_rows:w1_rows + 8, :]          # [8, 2*Fout1]

    # layer 0: both branches read the same x -> horizontal-concat weight, no [x|x] copy
    state = _dual_gat_layer(x, mask_add, w0, att0, fouts[0],
                            negative_slope, apply_relu=True, mxu_dtype=mxu_dtype)
    # layer 1: branches have diverged -> block-diagonal weight on the concatenated state
    state = _dual_gat_layer(state, mask_add, w1, att1, fouts[1],
                            negative_slope, apply_relu=False, mxu_dtype=mxu_dtype)

    fo = fouts[1]
    n = state.shape[0]
    xb = state[:, :fo]
    xl = state[:, fo:2 * fo]
    pieces = [xb, xl, xb + xl]                     # [base | lora | combined]
    pad = out_pad - 3 * fo
    if pad > 0:
        pieces.append(jnp.zeros((n, pad), jnp.float32))
    o_ref[...] = jnp.concatenate(pieces, axis=-1)  # one lane-dense store


# ---------------------------------------------------------------------------
# wrapper: parameter packing (tiny one-time XLA ops) + single pallas_call
# ---------------------------------------------------------------------------
def _pack_att(base_p, lora_p, fout):
    zf = jnp.zeros((1, fout), jnp.float32)
    return jnp.concatenate([
        jnp.concatenate([base_p["att_src"], zf], axis=1),
        jnp.concatenate([zf, lora_p["att_src"]], axis=1),
        jnp.concatenate([base_p["att_dst"], zf], axis=1),
        jnp.concatenate([zf, lora_p["att_dst"]], axis=1),
        jnp.concatenate([base_p["bias"], lora_p["bias"]], axis=1),
        jnp.zeros((3, 2 * fout), jnp.float32),
    ], axis=0)                                     # [8, 2*Fout]


def _pack_layer0(base_p, lora_p):
    # layer 0: both branches see the same input -> [x|x]@blockdiag(W, AB) == x@[W | AB]
    w = base_p["w"]
    ab = jnp.dot(lora_p["a"], lora_p["b"])         # fold rank-r product out of the kernel
    fin, fout = w.shape
    w_cat = jnp.concatenate([w, ab], axis=1)       # [Fin, 2*Fout]
    slab = jnp.concatenate([w_cat, _pack_att(base_p, lora_p, fout)], axis=0)
    return slab, fin                               # [Fin + 8, 2*Fout], weight row count


def _pack_layer1(base_p, lora_p):
    # TODO(synk): once 2*Fin / 2*Fout exceed a single MXU tile, split this into two
    #             matmuls (and the true rank-r path for the LoRA branch) instead of
    #             block-diag packing -- half the FLOPs/bytes here multiply zeros.
    w = base_p["w"]
    ab = jnp.dot(lora_p["a"], lora_p["b"])
    fin, fout = w.shape
    z = jnp.zeros((fin, fout), jnp.float32)
    w_blk = jnp.concatenate(
        [jnp.concatenate([w, z], axis=1),
         jnp.concatenate([z, ab], axis=1)], axis=0)            # [2*Fin, 2*Fout]
    slab = jnp.concatenate([w_blk, _pack_att(base_p, lora_p, fout)], axis=0)
    return slab, 2 * fin                           # [2*Fin + 8, 2*Fout], weight row count


def gnn_lora_forward(x, adj, base_params, lora_params, *, mxu_dtype=jnp.float32):
    assert len(base_params) == len(lora_params) == 2, "fused kernel built for gnn_layer_num=2"
    n, fin = x.shape
    p0, w0_rows = _pack_layer0(base_params[0], lora_params[0])
    p1, w1_rows = _pack_layer1(base_params[1], lora_params[1])
    fouts = (base_params[0]["w"].shape[1], base_params[1]["w"].shape[1])
    fo = fouts[1]
    out_pad = ((3 * fo + 127) // 128) * 128        # lane-dense output slab width

    # additive adjacency mask computed ONCE (0 on edges, NEG_INF elsewhere); packed with x
    # so the kernel sees a single data slab -> 3 input DMA descriptors total.
    mask_add = jnp.where(adj > 0, 0.0, NEG_INF).astype(jnp.float32)
    data = jnp.concatenate([x.astype(jnp.float32), mask_add], axis=1)   # [N, Fin + N]

    kernel = functools.partial(gnn_lora_kernel, fin=fin, fouts=fouts,
                               w0_rows=w0_rows, w1_rows=w1_rows,
                               negative_slope=NEG_SLOPE, out_pad=out_pad,
                               mxu_dtype=mxu_dtype)
    vmem = pl.BlockSpec(memory_space=pltpu.MemorySpace.VMEM)
    packed = pl.pallas_call(
        kernel,
        out_shape=jax.ShapeDtypeStruct((n, out_pad), jnp.float32),
        in_specs=[vmem] * 3,
        out_specs=vmem,
        # explicit limit so the same call is well-defined on v7x (64 MiB physical VMEM)
        compiler_params=pltpu.CompilerParams(vmem_limit_bytes=32 * 1024 * 1024),
    )(data, p0, p1)

    x_base = packed[:, :fo]
    x_lora = packed[:, fo:2 * fo]
    combined = packed[:, 2 * fo:3 * fo]
    return combined, x_base, x_lora


# ---------------------------------------------------------------------------
# pure-JAX reference (exact math) for the sanity check
# ---------------------------------------------------------------------------
def _ref_forward(x, adj, base_params, lora_params):
    def attn(feat, p):
        a_src = feat @ p["att_src"].T              # [N, 1] (per source node)
        a_dst = feat @ p["att_dst"].T              # [N, 1] (per dest node)
        s = a_dst + a_src.T
        s = jnp.where(s >= 0, s, NEG_SLOPE * s)
        s = jnp.where(adj > 0, s, NEG_INF)
        s = s - jnp.max(s, axis=-1, keepdims=True)
        e = jnp.exp(s) * adj
        a = e / jnp.sum(e, axis=-1, keepdims=True)
        return a @ feat + p["bias"]

    xb, xl = x, x
    n_layers = len(lora_params)
    for i in range(n_layers):
        xb = attn(xb @ base_params[i]["w"], base_params[i])
        xl = attn((xl @ lora_params[i]["a"]) @ lora_params[i]["b"], lora_params[i])
        if i < n_layers - 1:
            xb = jnp.maximum(xb, 0.0)
            xl = jnp.maximum(xl, 0.0)
    return xb + xl, xb, xl


# ---------------------------------------------------------------------------
# deterministic parameter construction + graph helpers
# ---------------------------------------------------------------------------
def make_params(key, input_dim, out_dim, r):
    # layer dims for gnn_layer_num == 2: input_dim -> 2*out_dim -> out_dim
    dims = [(input_dim, 2 * out_dim), (2 * out_dim, out_dim)]
    base_params, lora_params = [], []
    for fin, fout in dims:
        key, k1, k2, k3, k4, k5, k6, k7 = jax.random.split(key, 8)
        base_params.append({
            "w": jax.random.normal(k1, (fin, fout), jnp.float32) * (1.0 / np.sqrt(fin)),
            "att_src": jax.random.normal(k2, (1, fout), jnp.float32) * (1.0 / np.sqrt(fout)),
            "att_dst": jax.random.normal(k3, (1, fout), jnp.float32) * (1.0 / np.sqrt(fout)),
            "bias": jnp.zeros((1, fout), jnp.float32),
        })
        # NOTE: PyTorch LoRA init sets B = 0 (identity adaptation); small nonzero values
        # are used here so the LoRA compute path is actually exercised by the test.
        lora_params.append({
            "a": jax.random.normal(k4, (fin, r), jnp.float32) * (1.0 / np.sqrt(fin)),
            "b": jax.random.normal(k5, (r, fout), jnp.float32) * 0.05,
            "att_src": jax.random.normal(k6, (1, fout), jnp.float32) * (1.0 / np.sqrt(fout)),
            "att_dst": jax.random.normal(k7, (1, fout), jnp.float32) * (1.0 / np.sqrt(fout)),
            "bias": jnp.zeros((1, fout), jnp.float32),
        })
    return base_params, lora_params


def edge_index_to_adj(edge_index, num_nodes):
    # PyG convention: edge_index[0] = src, edge_index[1] = dst ; message flows src -> dst.
    src, dst = edge_index[0], edge_index[1]
    adj = jnp.zeros((num_nodes, num_nodes), jnp.float32).at[dst, src].set(1.0)
    # GATConv(add_self_loops=True): exactly one self loop per node.
    adj = jnp.maximum(adj, jnp.eye(num_nodes, dtype=jnp.float32))
    return adj


if __name__ == "__main__":
    N = 16          # num nodes
    INPUT_DIM = 32
    OUT_DIM = 16
    R = 8           # LoRA rank

    key = jax.random.PRNGKey(0)
    kx, kp = jax.random.split(key)

    # node features [num_nodes, input_dim]
    x = jax.random.normal(kx, (N, INPUT_DIM), jnp.float32)

    # bidirectional ring graph, edge_index [2, num_edges]
    idx = jnp.arange(N)
    src = jnp.concatenate([idx, (idx + 1) % N])
    dst = jnp.concatenate([(idx + 1) % N, idx])
    edge_index = jnp.stack([src, dst])          # [2, 32]
    adj = edge_index_to_adj(edge_index, N)

    base_params, lora_params = make_params(kp, INPUT_DIM, OUT_DIM, R)

    ref_c, ref_b, ref_l = _ref_forward(x, adj, base_params, lora_params)

    # --- f32 MXU operands (default; correct on all generations, tightest numerics) ----
    fwd = jax.jit(functools.partial(gnn_lora_forward, mxu_dtype=jnp.float32))
    combined, x_base, x_lora = fwd(x, adj, base_params, lora_params)
    jax.block_until_ready((combined, x_base, x_lora))
    # tolerance covers the A@B fold reordering and MXU f32 pass-splitting; the approx
    # softmax reciprocal has been removed so exact-division parity is restored.
    np.testing.assert_allclose(np.asarray(combined), np.asarray(ref_c), rtol=5e-3, atol=5e-3)
    np.testing.assert_allclose(np.asarray(x_base), np.asarray(ref_b), rtol=5e-3, atol=5e-3)
    np.testing.assert_allclose(np.asarray(x_lora), np.asarray(ref_l), rtol=5e-3, atol=5e-3)

    # --- bf16 MXU operands (recommended on v6e/v7x; f32 accumulate, f32 elementwise) ---
    fwd_bf16 = jax.jit(functools.partial(gnn_lora_forward, mxu_dtype=jnp.bfloat16))
    c16, b16, l16 = fwd_bf16(x, adj, base_params, lora_params)
    jax.block_until_ready((c16, b16, l16))
    # loose sanity bound: bf16 matmul inputs with f32 accumulation
    np.testing.assert_allclose(np.asarray(c16), np.asarray(ref_c), rtol=1e-1, atol=1e-1)

    print("KERNEL_OK")
</pallas_src>

<mosaic_0001>
module attributes {stable_mosaic.version = 11 : i64} {
  func.func @gnn_lora_kernel(%arg0: memref<16x48xf32, #tpu.memory_space<vmem>>, %arg1: memref<40x64xf32, #tpu.memory_space<vmem>>, %arg2: memref<72x32xf32, #tpu.memory_space<vmem>>, %arg3: memref<16x128xf32, #tpu.memory_space<vmem>>) attributes {dimension_semantics = [], scalar_prefetch = 0 : i64, scratch_operands = 0 : i64, tpu.core_type = #tpu.core_type<tc>} {
    %c0 = arith.constant 0 : index
    %c0_0 = arith.constant 0 : index
    %0 = vector.load %arg0[%c0, %c0_0] : memref<16x48xf32, #tpu.memory_space<vmem>>, vector<16x32xf32>
    %c0_1 = arith.constant 0 : index
    %c32 = arith.constant 32 : index
    %1 = vector.load %arg0[%c0_1, %c32] : memref<16x48xf32, #tpu.memory_space<vmem>>, vector<16x16xf32>
    %c0_2 = arith.constant 0 : index
    %c0_3 = arith.constant 0 : index
    %2 = vector.load %arg1[%c0_2, %c0_3] : memref<40x64xf32, #tpu.memory_space<vmem>>, vector<32x64xf32>
    %c32_4 = arith.constant 32 : index
    %c0_5 = arith.constant 0 : index
    %3 = vector.load %arg1[%c32_4, %c0_5] : memref<40x64xf32, #tpu.memory_space<vmem>>, vector<8x64xf32>
    %c0_6 = arith.constant 0 : index
    %c0_7 = arith.constant 0 : index
    %4 = vector.load %arg2[%c0_6, %c0_7] : memref<72x32xf32, #tpu.memory_space<vmem>>, vector<64x32xf32>
    %c64 = arith.constant 64 : index
    %c0_8 = arith.constant 0 : index
    %5 = vector.load %arg2[%c64, %c0_8] : memref<72x32xf32, #tpu.memory_space<vmem>>, vector<8x32xf32>
    %cst = arith.constant dense<0.000000e+00> : vector<16x64xf32>
    %6 = tpu.matmul %0, %2, %cst {dimension_numbers = #tpu.dot_dimension_numbers<[1], [0], [0], [1], [0, 0, 1, 1], [], []>} : vector<16x32xf32>, vector<32x64xf32>, vector<16x64xf32> -> vector<16x64xf32>
    %7 = vector.extract_strided_slice %3 {offsets = [0, 0], sizes = [2, 64], strides = [1, 1]} : vector<8x64xf32> to vector<2x64xf32>
    "tpu.trace_start"() <{level = 10 : i32, message = "rf,nf->rn"}> : () -> ()
    %cst_9 = arith.constant dense<0.000000e+00> : vector<2x16xf32>
    %8 = tpu.matmul %7, %6, %cst_9 {dimension_numbers = #tpu.dot_dimension_numbers<[1], [1], [0], [0], [0, 0, 1, 0], [], []>} : vector<2x64xf32>, vector<16x64xf32>, vector<2x16xf32> -> vector<2x16xf32>
    "tpu.trace_stop"() : () -> ()
    %9 = vector.extract_strided_slice %8 {offsets = [0, 0], sizes = [1, 16], strides = [1, 1]} : vector<2x16xf32> to vector<1x16xf32>
    %10 = vector.extract_strided_slice %8 {offsets = [1, 0], sizes = [1, 16], strides = [1, 1]} : vector<2x16xf32> to vector<1x16xf32>
    %11 = vector.extract_strided_slice %3 {offsets = [2, 0], sizes = [1, 64], strides = [1, 1]} : vector<8x64xf32> to vector<1x64xf32>
    %12 = vector.broadcast %11 : vector<1x64xf32> to vector<16x64xf32>
    %13 = arith.mulf %6, %12 : vector<16x64xf32>
    %cst_10 = arith.constant dense<0.000000e+00> : vector<16xf32>
    %14 = vector.multi_reduction <add>, %13, %cst_10 [1] : vector<16x64xf32> to vector<16xf32>
    %15 = vector.shape_cast %14 : vector<16xf32> to vector<16x1xf32>
    %16 = vector.extract_strided_slice %3 {offsets = [3, 0], sizes = [1, 64], strides = [1, 1]} : vector<8x64xf32> to vector<1x64xf32>
    %17 = vector.broadcast %16 : vector<1x64xf32> to vector<16x64xf32>
    %18 = arith.mulf %6, %17 : vector<16x64xf32>
    %cst_11 = arith.constant dense<0.000000e+00> : vector<16xf32>
    %19 = vector.multi_reduction <add>, %18, %cst_11 [1] : vector<16x64xf32> to vector<16xf32>
    %20 = vector.shape_cast %19 : vector<16xf32> to vector<16x1xf32>
    %21 = vector.broadcast %15 : vector<16x1xf32> to vector<16x16xf32>
    %22 = vector.broadcast %9 : vector<1x16xf32> to vector<16x16xf32>
    %23 = arith.addf %21, %22 : vector<16x16xf32>
    %cst_12 = arith.constant 0.000000e+00 : f32
    %24 = vector.broadcast %cst_12 : f32 to vector<16x16xf32>
    %25 = arith.cmpf oge, %23, %24 : vector<16x16xf32>
    %cst_13 = arith.constant 2.000000e-01 : f32
    %26 = vector.broadcast %cst_13 : f32 to vector<16x16xf32>
    %27 = arith.mulf %26, %23 : vector<16x16xf32>
    %28 = arith.select %25, %23, %27 : vector<16x16xi1>, vector<16x16xf32>
    %29 = arith.addf %28, %1 : vector<16x16xf32>
    %cst_14 = arith.constant dense<0xFF800000> : vector<16xf32>
    %30 = vector.multi_reduction <maximumf>, %29, %cst_14 [1] : vector<16x16xf32> to vector<16xf32>
    %31 = vector.shape_cast %30 : vector<16xf32> to vector<16x1xf32>
    %32 = vector.broadcast %31 : vector<16x1xf32> to vector<16x16xf32>
    %33 = arith.subf %29, %32 : vector<16x16xf32>
    %34 = math.exp %33 : vector<16x16xf32>
    %cst_15 = arith.constant dense<0.000000e+00> : vector<16xf32>
    %35 = vector.multi_reduction <add>, %34, %cst_15 [1] : vector<16x16xf32> to vector<16xf32>
    %36 = vector.shape_cast %35 : vector<16xf32> to vector<16x1xf32>
    %cst_16 = arith.constant 1.000000e-30 : f32
    %37 = vector.broadcast %cst_16 : f32 to vector<16x1xf32>
    %38 = arith.maximumf %36, %37 : vector<16x1xf32>
    %39 = vector.broadcast %38 : vector<16x1xf32> to vector<16x16xf32>
    %40 = arith.divf %34, %39 : vector<16x16xf32>
    %41 = vector.broadcast %20 : vector<16x1xf32> to vector<16x16xf32>
    %42 = vector.broadcast %10 : vector<1x16xf32> to vector<16x16xf32>
    %43 = arith.addf %41, %42 : vector<16x16xf32>
    %cst_17 = arith.constant 0.000000e+00 : f32
    %44 = vector.broadcast %cst_17 : f32 to vector<16x16xf32>
    %45 = arith.cmpf oge, %43, %44 : vector<16x16xf32>
    %cst_18 = arith.constant 2.000000e-01 : f32
    %46 = vector.broadcast %cst_18 : f32 to vector<16x16xf32>
    %47 = arith.mulf %46, %43 : vector<16x16xf32>
    %48 = arith.select %45, %43, %47 : vector<16x16xi1>, vector<16x16xf32>
    %49 = arith.addf %48, %1 : vector<16x16xf32>
    %cst_19 = arith.constant dense<0xFF800000> : vector<16xf32>
    %50 = vector.multi_reduction <maximumf>, %49, %cst_19 [1] : vector<16x16xf32> to vector<16xf32>
    %51 = vector.shape_cast %50 : vector<16xf32> to vector<16x1xf32>
    %52 = vector.broadcast %51 : vector<16x1xf32> to vector<16x16xf32>
    %53 = arith.subf %49, %52 : vector<16x16xf32>
    %54 = math.exp %53 : vector<16x16xf32>
    %cst_20 = arith.constant dense<0.000000e+00> : vector<16xf32>
    %55 = vector.multi_reduction <add>, %54, %cst_20 [1] : vector<16x16xf32> to vector<16xf32>
    %56 = vector.shape_cast %55 : vector<16xf32> to vector<16x1xf32>
    %cst_21 = arith.constant 1.000000e-30 : f32
    %57 = vector.broadcast %cst_21 : f32 to vector<16x1xf32>
    %58 = arith.maximumf %56, %57 : vector<16x1xf32>
    %59 = vector.broadcast %58 : vector<16x1xf32> to vector<16x16xf32>
    %60 = arith.divf %54, %59 : vector<16x16xf32>
    %cst_22 = arith.constant dense<0.000000e+00> : vector<16x64xf32>
    %61 = tpu.matmul %40, %6, %cst_22 {dimension_numbers = #tpu.dot_dimension_numbers<[1], [0], [0], [1], [0, 0, 1, 1], [], []>} : vector<16x16xf32>, vector<16x64xf32>, vector<16x64xf32> -> vector<16x64xf32>
    %cst_23 = arith.constant dense<0.000000e+00> : vector<16x64xf32>
    %62 = tpu.matmul %60, %6, %cst_23 {dimension_numbers = #tpu.dot_dimension_numbers<[1], [0], [0], [1], [0, 0, 1, 1], [], []>} : vector<16x16xf32>, vector<16x64xf32>, vector<16x64xf32> -> vector<16x64xf32>
    %63 = tpu.iota {dimensions = array<i32: 1>} : vector<16x64xi32>
    %c32_i32 = arith.constant 32 : i32
    %64 = vector.broadcast %c32_i32 : i32 to vector<16x64xi32>
    %65 = arith.cmpi slt, %63, %64 : vector<16x64xi32>
    %66 = arith.select %65, %61, %62 : vector<16x64xi1>, vector<16x64xf32>
    %67 = vector.extract_strided_slice %3 {offsets = [4, 0], sizes = [1, 64], strides = [1, 1]} : vector<8x64xf32> to vector<1x64xf32>
    %68 = vector.broadcast %67 : vector<1x64xf32> to vector<16x64xf32>
    %69 = arith.addf %66, %68 : vector<16x64xf32>
    %cst_24 = arith.constant 0.000000e+00 : f32
    %70 = vector.broadcast %cst_24 : f32 to vector<16x64xf32>
    %71 = arith.maximumf %69, %70 : vector<16x64xf32>
    %cst_25 = arith.constant dense<0.000000e+00> : vector<16x32xf32>
    %72 = tpu.matmul %71, %4, %cst_25 {dimension_numbers = #tpu.dot_dimension_numbers<[1], [0], [0], [1], [0, 0, 1, 1], [], []>} : vector<16x64xf32>, vector<64x32xf32>, vector<16x32xf32> -> vector<16x32xf32>
    %73 = vector.extract_strided_slice %5 {offsets = [0, 0], sizes = [2, 32], strides = [1, 1]} : vector<8x32xf32> to vector<2x32xf32>
    "tpu.trace_start"() <{level = 10 : i32, message = "rf,nf->rn"}> : () -> ()
    %cst_26 = arith.constant dense<0.000000e+00> : vector<2x16xf32>
    %74 = tpu.matmul %73, %72, %cst_26 {dimension_numbers = #tpu.dot_dimension_numbers<[1], [1], [0], [0], [0, 0, 1, 0], [], []>} : vector<2x32xf32>, vector<16x32xf32>, vector<2x16xf32> -> vector<2x16xf32>
    "tpu.trace_stop"() : () -> ()
    %75 = vector.extract_strided_slice %74 {offsets = [0, 0], sizes = [1, 16], strides = [1, 1]} : vector<2x16xf32> to vector<1x16xf32>
    %76 = vector.extract_strided_slice %74 {offsets = [1, 0], sizes = [1, 16], strides = [1, 1]} : vector<2x16xf32> to vector<1x16xf32>
    %77 = vector.extract_strided_slice %5 {offsets = [2, 0], sizes = [1, 32], strides = [1, 1]} : vector<8x32xf32> to vector<1x32xf32>
    %78 = vector.broadcast %77 : vector<1x32xf32> to vector<16x32xf32>
    %79 = arith.mulf %72, %78 : vector<16x32xf32>
    %cst_27 = arith.constant dense<0.000000e+00> : vector<16xf32>
    %80 = vector.multi_reduction <add>, %79, %cst_27 [1] : vector<16x32xf32> to vector<16xf32>
    %81 = vector.shape_cast %80 : vector<16xf32> to vector<16x1xf32>
    %82 = vector.extract_strided_slice %5 {offsets = [3, 0], sizes = [1, 32], strides = [1, 1]} : vector<8x32xf32> to vector<1x32xf32>
    %83 = vector.broadcast %82 : vector<1x32xf32> to vector<16x32xf32>
    %84 = arith.mulf %72, %83 : vector<16x32xf32>
    %cst_28 = arith.constant dense<0.000000e+00> : vector<16xf32>
    %85 = vector.multi_reduction <add>, %84, %cst_28 [1] : vector<16x32xf32> to vector<16xf32>
    %86 = vector.shape_cast %85 : vector<16xf32> to vector<16x1xf32>
    %87 = vector.broadcast %81 : vector<16x1xf32> to vector<16x16xf32>
    %88 = vector.broadcast %75 : vector<1x16xf32> to vector<16x16xf32>
    %89 = arith.addf %87, %88 : vector<16x16xf32>
    %cst_29 = arith.constant 0.000000e+00 : f32
    %90 = vector.broadcast %cst_29 : f32 to vector<16x16xf32>
    %91 = arith.cmpf oge, %89, %90 : vector<16x16xf32>
    %cst_30 = arith.constant 2.000000e-01 : f32
    %92 = vector.broadcast %cst_30 : f32 to vector<16x16xf32>
    %93 = arith.mulf %92, %89 : vector<16x16xf32>
    %94 = arith.select %91, %89, %93 : vector<16x16xi1>, vector<16x16xf32>
    %95 = arith.addf %94, %1 : vector<16x16xf32>
    %cst_31 = arith.constant dense<0xFF800000> : vector<16xf32>
    %96 = vector.multi_reduction <maximumf>, %95, %cst_31 [1] : vector<16x16xf32> to vector<16xf32>
    %97 = vector.shape_cast %96 : vector<16xf32> to vector<16x1xf32>
    %98 = vector.broadcast %97 : vector<16x1xf32> to vector<16x16xf32>
    %99 = arith.subf %95, %98 : vector<16x16xf32>
    %100 = math.exp %99 : vector<16x16xf32>
    %cst_32 = arith.constant dense<0.000000e+00> : vector<16xf32>
    %101 = vector.multi_reduction <add>, %100, %cst_32 [1] : vector<16x16xf32> to vector<16xf32>
    %102 = vector.shape_cast %101 : vector<16xf32> to vector<16x1xf32>
    %cst_33 = arith.constant 1.000000e-30 : f32
    %103 = vector.broadcast %cst_33 : f32 to vector<16x1xf32>
    %104 = arith.maximumf %102, %103 : vector<16x1xf32>
    %105 = vector.broadcast %104 : vector<16x1xf32> to vector<16x16xf32>
    %106 = arith.divf %100, %105 : vector<16x16xf32>
    %107 = vector.broadcast %86 : vector<16x1xf32> to vector<16x16xf32>
    %108 = vector.broadcast %76 : vector<1x16xf32> to vector<16x16xf32>
    %109 = arith.addf %107, %108 : vector<16x16xf32>
    %cst_34 = arith.constant 0.000000e+00 : f32
    %110 = vector.broadcast %cst_34 : f32 to vector<16x16xf32>
    %111 = arith.cmpf oge, %109, %110 : vector<16x16xf32>
    %cst_35 = arith.constant 2.000000e-01 : f32
    %112 = vector.broadcast %cst_35 : f32 to vector<16x16xf32>
    %113 = arith.mulf %112, %109 : vector<16x16xf32>
    %114 = arith.select %111, %109, %113 : vector<16x16xi1>, vector<16x16xf32>
    %115 = arith.addf %114, %1 : vector<16x16xf32>
    %cst_36 = arith.constant dense<0xFF800000> : vector<16xf32>
    %116 = vector.multi_reduction <maximumf>, %115, %cst_36 [1] : vector<16x16xf32> to vector<16xf32>
    %117 = vector.shape_cast %116 : vector<16xf32> to vector<16x1xf32>
    %118 = vector.broadcast %117 : vector<16x1xf32> to vector<16x16xf32>
    %119 = arith.subf %115, %118 : vector<16x16xf32>
    %120 = math.exp %119 : vector<16x16xf32>
    %cst_37 = arith.constant dense<0.000000e+00> : vector<16xf32>
    %121 = vector.multi_reduction <add>, %120, %cst_37 [1] : vector<16x16xf32> to vector<16xf32>
    %122 = vector.shape_cast %121 : vector<16xf32> to vector<16x1xf32>
    %cst_38 = arith.constant 1.000000e-30 : f32
    %123 = vector.broadcast %cst_38 : f32 to vector<16x1xf32>
    %124 = arith.maximumf %122, %123 : vector<16x1xf32>
    %125 = vector.broadcast %124 : vector<16x1xf32> to vector<16x16xf32>
    %126 = arith.divf %120, %125 : vector<16x16xf32>
    %cst_39 = arith.constant dense<0.000000e+00> : vector<16x32xf32>
    %127 = tpu.matmul %106, %72, %cst_39 {dimension_numbers = #tpu.dot_dimension_numbers<[1], [0], [0], [1], [0, 0, 1, 1], [], []>} : vector<16x16xf32>, vector<16x32xf32>, vector<16x32xf32> -> vector<16x32xf32>
    %cst_40 = arith.constant dense<0.000000e+00> : vector<16x32xf32>
    %128 = tpu.matmul %126, %72, %cst_40 {dimension_numbers = #tpu.dot_dimension_numbers<[1], [0], [0], [1], [0, 0, 1, 1], [], []>} : vector<16x16xf32>, vector<16x32xf32>, vector<16x32xf32> -> vector<16x32xf32>
    %129 = tpu.iota {dimensions = array<i32: 1>} : vector<16x32xi32>
    %c16_i32 = arith.constant 16 : i32
    %130 = vector.broadcast %c16_i32 : i32 to vector<16x32xi32>
    %131 = arith.cmpi slt, %129, %130 : vector<16x32xi32>
    %132 = arith.select %131, %127, %128 : vector<16x32xi1>, vector<16x32xf32>
    %133 = vector.extract_strided_slice %5 {offsets = [4, 0], sizes = [1, 32], strides = [1, 1]} : vector<8x32xf32> to vector<1x32xf32>
    %134 = vector.broadcast %133 : vector<1x32xf32> to vector<16x32xf32>
    %135 = arith.addf %132, %134 : vector<16x32xf32>
    %136 = vector.extract_strided_slice %135 {offsets = [0, 0], sizes = [16, 16], strides = [1, 1]} : vector<16x32xf32> to vector<16x16xf32>
    %137 = vector.extract_strided_slice %135 {offsets = [0, 16], sizes = [16, 16], strides = [1, 1]} : vector<16x32xf32> to vector<16x16xf32>
    %138 = arith.addf %136, %137 : vector<16x16xf32>
    %cst_41 = arith.constant 0.000000e+00 : f32
    %139 = vector.broadcast %cst_41 : f32 to vector<16x80xf32>
    %140 = tpu.concatenate %136, %137, %138, %139 in 1 : vector<16x16xf32>, vector<16x16xf32>, vector<16x16xf32>, vector<16x80xf32> -> vector<16x128xf32>
    %c0_42 = arith.constant 0 : index
    %c0_43 = arith.constant 0 : index
    %141 = vector.load %arg3[%c0_42, %c0_43] : memref<16x128xf32, #tpu.memory_space<vmem>>, vector<16x128xf32>
    tpu.vector_store %arg3[%c0_42, %c0_43], %140 {strides = array<i32>} : memref<16x128xf32, #tpu.memory_space<vmem>>, vector<16x128xf32>,
    return
  }
}

</mosaic_0001>

<bundles_post_ra>
// kernel: gnn_lora_forward.1
= control target key start
LH: loop header
LB: loop body
LE: loop exit
PB: predicated region body
PF: predicated region fallthrough
CT: control target
= control target key end

     0   :  { %vm30_vm0 = vcmask 261120   ;;  %v1099_v6 = vmov 0.0   ;;  %vm1100_vm1 = vmmov 0   ;;  %v192_v7 = vlaneseq  ;;  %s1103_s16 = smov 32   ;;  %s1305_s1 = inlined_call_operand.vmem [shape: f32[40,64], index: 1, kind: input, shape index: {}]   ;;  %s1306_s0 = inlined_call_operand.vmem [shape: f32[16,48], index: 0, kind: input, shape index: {}]   ;;  %s1307_s2 = inlined_call_operand.vmem [shape: f32[72,32], index: 2, kind: input, shape index: {}]   ;;  %s1308_s3 = inlined_call_operand.vmem [shape: f32[16,128], index: 3, kind: output, shape index: {}]  }
   0x1   :  { %v19_v0 = vld [vmem:[%s1305_s1 + $0x18] sm:$0xff]  ;;  %v18_v1 = vld [vmem:[%s1305_s1 + $0x10] sm:$0xff]  ;;  %v14_v2 = vld [vmem:[%s1306_s0] sm:$0xff]  ;;  %1001 = vmatprep.subr.mxu1 %v1099_v6  ;;  %1005 = vmatprep.mubr.msk.f32.mxu1 %vm1100_vm1, %v1099_v6  ;;  %vm112_vm2 = vcmask 523264   ;;  %vm236_vm7 = vcmask 130048   ;;  %vm925_vm14 = vcmask 392192  }
   0x2   :  { %990 = vmatprep.subr.mxu0 %v19_v0  ;;  %v17_v3 = vld [vmem:[%s1305_s1 + $0x8] sm:$0xff]  ;;  %998 = vmatprep.mubr.msk.f32.mxu0 %vm30_vm0, %v14_v2  ;;  %v16_v4 = vld [vmem:[%s1305_s1] sm:$0xff]  ;;  %v1148_v8 = vshrl.u32 %v192_v7, 7 }
   0x3   :  { %991 = vmatpush3.msra.mxu0 %v19_v0  ;;  %v15_v5 = vld [vmem:[%s1306_s0 + $0x8] sm:$0xff]  ;;  %v1154_v10 = vld [vmem:[%s1305_s1 + $0x20] sm:$0xff]  ;;  %s1101_s0 = smov 96  }
   0x4   :  { %992 = vmatprep.subr.mxu0 %v18_v1  ;;  %v194_v9 = vsub.s32 2, %v1148_v8  ;;  %v206_v11 = vsub.s32 3, %v1148_v8  ;;  %v218_v26 = vsub.s32 0, %v1148_v8  ;;  %v263_v27 = vsub.s32 1, %v1148_v8 }
   0x5   :  { %993 = vmatpush3.msra.mxu0 %v18_v1 }
   0x6   :  { %994 = vmatprep.subr.mxu0 %v17_v3  ;;  %v195_v12 = vrot.slane %v1154_v10, %v194_v9  ;;  %v207_v13 = vrot.slane %v1154_v10, %v206_v11 }
   0x7   :  { %995 = vmatpush3.msra.mxu0 %v17_v3 }
   0x8   :  { %996 = vmatprep.subr.mxu0 %v16_v4 }
   0x9   :  { %997 = vmatpush3.msra.mxu0 %v16_v4 }
   0xa   :  { %999 = vmatmul.mubr.msk.f32.vlgmr.msra.gmra.mxu0 %vm30_vm0, %v15_v5 }
  0xca   :  { %v1000_v14 = vpop.f32.mrf.mxu0 }
  0xcb   :  { %1002 = vmatpush3.xpose.msk.msra.mxu1 %vm112_vm2, %v1000_v14  ;;  %1008 = vmatprep.subr.mxu0 %v1000_v14  ;;  %v197_v15 = vmul.f32 %v1000_v14, %v195_v12  ;;  %v209_v19 = vmul.f32 %v1000_v14, %v207_v13 }
  0xcc   :  { %v103_v16 = vpop.f32.mrf.mxu0  ;;  %1009 = vmatpush3.msra.mxu0 %v1000_v14  ;;  %1003 = vmatprep.subr.mxu1 %v1099_v6 }
  0xcd   :  { %1010 = vmatprep.subr.mxu0 %v103_v16  ;;  %v201_v17 = vsel %vm112_vm2, %v197_v15, 0.0  ;;  %v196_v18 = vmul.f32 %v195_v12, %v103_v16  ;;  %v208_v21 = vmul.f32 %v207_v13, %v103_v16  ;;  %v213_v22 = vsel %vm112_vm2, %v209_v19, 0.0 }
  0xce   :  { %202 = vadd.xlane.f32.xlu1 %v201_v17  ;;  %1011 = vmatpush3.msra.mxu0 %v103_v16 }
  0xcf   :  { %1004 = vmatpush3.xpose.msk.msra.mxu1 %vm112_vm2, %v103_v16  ;;  %v198_v20 = vsel %vm112_vm2, %v196_v18, 0.0  ;;  %v210_v23 = vsel %vm112_vm2, %v208_v21, 0.0  ;;  %v28_v18 = vld [vmem:[%s1307_s2 + $0x38] sm:$0xff] }
  0xd0   :  { %199 = vadd.xlane.f32.xlu0 %v198_v20  ;;  %1015 = vmatprep.subr.mxu1 %v1000_v14 }
  0xd1   :  { %1022 = vmatprep.subr.mxu0 %v28_v18 }
  0xd2   :  { %214 = vadd.xlane.f32.xlu1 %v213_v22  ;;  %1006 = vmatmul.mubr.msk.f32.vlgmr.msra.gmra.mxu1 %vm112_vm2, %v1154_v10 }
  0xd3   :  { %1016 = vmatpush3.msra.mxu1 %v1000_v14 }
  0xd4   :  { %211 = vadd.xlane.f32.xlu0 %v210_v23  ;;  %1017 = vmatprep.subr.mxu1 %v103_v16 }
  0xd5   :  { %1018 = vmatpush3.msra.mxu1 %v103_v16 }
  0xd6   :  { %1041 = vmatprep.subr.mxu1 %v1099_v6 }
  0xe3   :  { %230 = vrot.lane.b32.xlu1 %v15_v5, %s1101_s0 }
  0xea   :  { %228 = vrot.lane.b32.xlu0 %v14_v2, %s1101_s0 }
 0x157   :  { %v203_v25 = vpop.xlane.xlu1 %202 }
 0x159   :  { %v200_v24 = vpop.xlane.xlu0 %199 }
 0x15b   :  { %v215_v32 = vpop.xlane.xlu1 %214 }
 0x15d   :  { %v212_v29 = vpop.xlane.xlu0 %211 }
 0x15f   :  { %v1181_v43 = vpop.permute.xlu1 %230 }
 0x161   :  { %v1179_v38 = vpop.permute.xlu0 %228 }
 0x192   :  { %v188_v28 = vpop.f32.mrf.mxu1 }
 0x193   :  { %v219_v30 = vrot.slane %v188_v28, %v218_v26  ;;  %v264_v31 = vrot.slane %v188_v28, %v263_v27 }
 0x194   :  { %v1007_v33 = vpop.f32.mrf.mxu1 }
 0x195   :  { %v220_v34 = vadd.f32 %v219_v30, %v200_v24  ;;  %v221_v35 = vadd.f32 %v219_v30, %v203_v25  ;;  %v265_v36 = vadd.f32 %v264_v31, %v212_v29  ;;  %v266_v37 = vadd.f32 %v264_v31, %v215_v32 }
 0x197   :  { %vm267_vm3 = vcmp.ge.f32.partialorder %v265_v36, 0.0  ;;  %v269_v39 = vmul.f32 0.2, %v265_v36  ;;  %vm222_vm4 = vcmp.ge.f32.partialorder %v220_v34, 0.0  ;;  %v224_v40 = vmul.f32 0.2, %v220_v34 }
 0x198   :  { %vm223_vm5 = vcmp.ge.f32.partialorder %v221_v35, 0.0  ;;  %v225_v41 = vmul.f32 0.2, %v221_v35  ;;  %vm268_vm6 = vcmp.ge.f32.partialorder %v266_v37, 0.0  ;;  %v270_v42 = vmul.f32 0.2, %v266_v37 }
 0x199   :  { %v271_v44 = vsel %vm267_vm3, %v265_v36, %v269_v39  ;;  %v226_v45 = vsel %vm222_vm4, %v220_v34, %v224_v40  ;;  %v26_v39 = vld [vmem:[%s1307_s2 + $0x28] sm:$0xff]  ;;  %v25_v40 = vld [vmem:[%s1307_s2 + $0x20] sm:$0xff] }
 0x19a   :  { %v273_v46 = vadd.f32 %v271_v44, %v1179_v38  ;;  %v234_v47 = vadd.f32 %v1179_v38, %v226_v45  ;;  %v227_v48 = vsel %vm223_vm5, %v221_v35, %v225_v41  ;;  %v272_v49 = vsel %vm268_vm6, %v266_v37, %v270_v42  ;;  %v27_v37 = vld [vmem:[%s1307_s2 + $0x30] sm:$0xff]  ;;  %v24_v41 = vld [vmem:[%s1307_s2 + $0x18] sm:$0xff]  ;;  %v22_v44 = vld [vmem:[%s1307_s2 + $0x8] sm:$0xff] }
 0x19b   :  { %v235_v52 = vadd.f32 %v1181_v43, %v227_v48  ;;  %v274_v53 = vadd.f32 %v272_v49, %v1181_v43  ;;  %v23_v42 = vld [vmem:[%s1307_s2 + $0x10] sm:$0xff]  ;;  %v21_v45 = vld [vmem:[%s1307_s2] sm:$0xff] }
 0x19c   :  { %v275_v50 = vsel %vm236_vm7, %v273_v46, -inf  ;;  %v237_v51 = vsel %vm236_vm7, %v234_v47, -inf }
 0x19d   :  { %276 = vmax.xlane.f32.xlu0 %v275_v50  ;;  %238 = vmax.xlane.f32.xlu1 %v237_v51  ;;  %v240_v54 = vsel %vm236_vm7, %v235_v52, -inf  ;;  %v278_v55 = vsel %vm236_vm7, %v274_v53, -inf }
 0x1a1   :  { %241 = vmax.xlane.f32.xlu0 %v240_v54  ;;  %279 = vmax.xlane.f32.xlu1 %v278_v55 }
 0x226   :  { %v277_v56 = vpop.xlane.xlu0 %276  ;;  %v239_v57 = vpop.xlane.xlu1 %238 }
 0x227   :  { %v281_v58 = vsub.f32 %v273_v46, %v277_v56  ;;  %v243_v59 = vsub.f32 %v234_v47, %v239_v57  ;;  %v1226_v46 = vand.u32 127, %v192_v7  ;;  %v468_v47 = vsub.s32 4, %v1148_v8  ;;  %v1238_v7 = vld [vmem:[%s1307_s2 + $0x40] sm:$0xff]  ;;  %s1102_s2 = smov 112  }
 0x229   :  { %v283_v60 = vmul.f32 1.442695, %v281_v58  ;;  %v245_v61 = vmul.f32 1.442695, %v243_v59  ;;  %vm463_vm8 = vcmp.lt.s32.totalorder %v1226_v46, 32  ;;  %v469_v49 = vrot.slane %v1154_v10, %v468_v47 }
 0x22a   :  { %v242_v62 = vpop.xlane.xlu0 %241  ;;  %v280_v63 = vpop.xlane.xlu1 %279  ;;  %v637_v10 = vrot.slane %v1238_v7, %v194_v9  ;;  %v649_v59 = vrot.slane %v1238_v7, %v206_v11  ;;  %vm896_vm13 = vcmp.lt.s32.totalorder %v1226_v46, 16 }
 0x22b   :  { %1067 = vpow2.f32 %v283_v60  ;;  %v244_v0 = vsub.f32 %v235_v52, %v242_v62  ;;  %v282_v1 = vsub.f32 %v274_v53, %v280_v63 }
 0x22c   :  { %1069 = vpow2.f32 %v245_v61 }
 0x22d   :  { %v247_v2 = vmul.f32 1.442695, %v244_v0  ;;  %v285_v3 = vmul.f32 1.442695, %v282_v1 }
 0x22f   :  { %1071 = vpow2.f32 %v247_v2 }
 0x230   :  { %1073 = vpow2.f32 %v285_v3 }
 0x238   :  { %v1068_v4 = vpop.eup %1067 }
 0x239   :  { %v1070_v5 = vpop.eup %1069  ;;  %v287_v12 = vsel %vm236_vm7, %v1068_v4, 0.0 }
 0x23a   :  { %288 = vadd.xlane.f32.xlu1 %v287_v12  ;;  %v249_v13 = vsel %vm236_vm7, %v1070_v5, 0.0 }
 0x23b   :  { %250 = vadd.xlane.f32.xlu0 %v249_v13 }
 0x23c   :  { %v1072_v14 = vpop.eup %1071 }
 0x23d   :  { %v1074_v15 = vpop.eup %1073  ;;  %v252_v16 = vsel %vm236_vm7, %v1072_v14, 0.0 }
 0x23e   :  { %v290_v17 = vsel %vm236_vm7, %v1074_v15, 0.0 }
 0x23f   :  { %253 = vadd.xlane.f32.xlu0 %v252_v16  ;;  %291 = vadd.xlane.f32.xlu1 %v290_v17 }
 0x2c3   :  { %v289_v19 = vpop.xlane.xlu1 %288 }
 0x2c4   :  { %v251_v20 = vpop.xlane.xlu0 %250  ;;  %v293_v21 = vmax.f32 %v289_v19, 1e-30 }
 0x2c5   :  { %v255_v22 = vmax.f32 %v251_v20, 1e-30 }
 0x2c6   :  { %1075 = vrcp.f32 %v293_v21 }
 0x2c7   :  { %1077 = vrcp.f32 %v255_v22 }
 0x2c8   :  { %v254_v23 = vpop.xlane.xlu0 %253  ;;  %v292_v24 = vpop.xlane.xlu1 %291 }
 0x2c9   :  { %v256_v25 = vmax.f32 %v254_v23, 1e-30  ;;  %v294_v28 = vmax.f32 %v292_v24, 1e-30 }
 0x2cb   :  { %1079 = vrcp.f32 %v256_v25 }
 0x2cc   :  { %1081 = vrcp.f32 %v294_v28 }
 0x2d3   :  { %v1076_v29 = vpop.eup %1075 }
 0x2d4   :  { %v1078_v30 = vpop.eup %1077  ;;  %v296_v31 = vmul.f32 %v1076_v29, %v1068_v4 }
 0x2d5   :  { %v258_v32 = vmul.f32 %v1078_v30, %v1070_v5 }
 0x2d6   :  { %1019 = vmatprep.mubr.msk.f32.mxu1 %vm236_vm7, %v296_v31 }
 0x2d7   :  { %1012 = vmatprep.mubr.msk.f32.mxu0 %vm236_vm7, %v258_v32 }
 0x2d8   :  { %v1080_v33 = vpop.eup %1079 }
 0x2d9   :  { %v1082_v34 = vpop.eup %1081  ;;  %v260_v35 = vmul.f32 %v1080_v33, %v1072_v14 }
 0x2da   :  { %v298_v36 = vmul.f32 %v1082_v34, %v1074_v15 }
 0x2db   :  { %1013 = vmatmul.mubr.msk.f32.vlgmr.msra.gmra.mxu0 %vm236_vm7, %v260_v35 }
 0x2dc   :  { %1020 = vmatmul.mubr.msk.f32.vlgmr.msra.gmra.mxu1 %vm236_vm7, %v298_v36  ;;  %1023 = vmatpush3.msra.mxu0 %v28_v18 }
 0x2dd   :  { %1024 = vmatprep.subr.mxu0 %v27_v37  ;;  %1045 = vmatprep.mubr.msk.f32.mxu1 %vm1100_vm1, %v1099_v6 }
 0x2de   :  { %1025 = vmatpush3.msra.mxu0 %v27_v37 }
 0x2df   :  { %1026 = vmatprep.subr.mxu0 %v26_v39 }
 0x2e0   :  { %1027 = vmatpush3.msra.mxu0 %v26_v39 }
 0x2e1   :  { %1028 = vmatprep.subr.mxu0 %v25_v40 }
 0x2e2   :  { %1029 = vmatpush3.msra.mxu0 %v25_v40 }
 0x2e3   :  { %1030 = vmatprep.subr.mxu0 %v24_v41 }
 0x2e4   :  { %1031 = vmatpush3.msra.mxu0 %v24_v41 }
 0x2e5   :  { %1032 = vmatprep.subr.mxu0 %v23_v42 }
 0x2e6   :  { %1033 = vmatpush3.msra.mxu0 %v23_v42 }
 0x2e7   :  { %1034 = vmatprep.subr.mxu0 %v22_v44 }
 0x2e8   :  { %1035 = vmatpush3.msra.mxu0 %v22_v44 }
 0x2e9   :  { %1036 = vmatprep.subr.mxu0 %v21_v45 }
 0x2ea   :  { %1037 = vmatpush3.msra.mxu0 %v21_v45 }
 0x39b   :  { %v1014_v48 = vpop.f32.mrf.mxu0 }
 0x39c   :  { %v1021_v50 = vpop.f32.mrf.mxu1 }
 0x39d   :  { %v465_v51 = vsel %vm463_vm8, %v1014_v48, %v1021_v50  ;;  %v371_v52 = vpop.f32.mrf.mxu0 }
 0x39e   :  { %v452_v53 = vpop.f32.mrf.mxu1  ;;  %v471_v54 = vadd.f32 %v469_v49, %v465_v51 }
 0x39f   :  { %v464_v55 = vsel %vm463_vm8, %v371_v52, %v452_v53 }
 0x3a0   :  { %v470_v56 = vadd.f32 %v469_v49, %v464_v55  ;;  %v473_v58 = vmax.f32 %v471_v54, 0.0 }
 0x3a2   :  { %v472_v57 = vmax.f32 %v470_v56, 0.0 }
 0x3a4   :  { %1038 = vmatprep.mubr.msk.f32.mxu0 %vm112_vm2, %v472_v57 }
 0x3a5   :  { %1039 = vmatmul.mubr.msk.f32.vlgmr.msra.gmra.mxu0 %vm112_vm2, %v473_v58 }
 0x465   :  { %v1246_v60 = vpop.f32.mrf.mxu0 }
 0x466   :  { %1042 = vmatpush3.xpose.msk.msra.mxu1 %vm30_vm0, %v1246_v60  ;;  %v639_v61 = vmul.f32 %v1246_v60, %v637_v10  ;;  %v651_v9 = vmul.f32 %v1246_v60, %v649_v59 }
 0x467   :  { %v1251_v62 = vpop.f32.mrf.mxu0  ;;  %1043 = vmatprep.subr.mxu1 %v1099_v6 }
 0x468   :  { %v643_v63 = vsel %vm30_vm0, %v639_v61, 0.0  ;;  %v638_v0 = vmul.f32 %v637_v10, %v1251_v62  ;;  %v650_v1 = vmul.f32 %v649_v59, %v1251_v62  ;;  %v655_v2 = vsel %vm30_vm0, %v651_v9, 0.0 }
 0x469   :  { %644 = vadd.xlane.f32.xlu1 %v643_v63 }
 0x46a   :  { %1044 = vmatpush3.xpose.msk.msra.mxu1 %vm30_vm0, %v1251_v62  ;;  %v640_v11 = vsel %vm30_vm0, %v638_v0, 0.0  ;;  %v652_v6 = vsel %vm30_vm0, %v650_v1, 0.0 }
 0x46b   :  { %641 = vadd.xlane.f32.xlu0 %v640_v11  ;;  %1048 = vmatprep.subr.mxu1 %v1246_v60 }
 0x46d   :  { %656 = vadd.xlane.f32.xlu1 %v655_v2  ;;  %1046 = vmatmul.mubr.msk.f32.vlgmr.msra.gmra.mxu1 %vm30_vm0, %v1238_v7 }
 0x46e   :  { %1049 = vmatpush3.msra.mxu1 %v1246_v60 }
 0x46f   :  { %653 = vadd.xlane.f32.xlu0 %v652_v6  ;;  %1050 = vmatprep.subr.mxu1 %v1251_v62 }
 0x470   :  { %1051 = vmatpush3.msra.mxu1 %v1251_v62 }
 0x471   :  { %1055 = vmatprep.subr.mxu1 %v1246_v60 }
 0x4f2   :  { %v645_v3 = vpop.xlane.xlu1 %644 }
 0x4f4   :  { %v642_v4 = vpop.xlane.xlu0 %641 }
 0x4f6   :  { %v657_v12 = vpop.xlane.xlu1 %656 }
 0x4f8   :  { %v654_v15 = vpop.xlane.xlu0 %653 }
 0x52d   :  { %v630_v5 = vpop.f32.mrf.mxu1 }
 0x52e   :  { %v661_v13 = vrot.slane %v630_v5, %v218_v26  ;;  %v699_v14 = vrot.slane %v630_v5, %v263_v27 }
 0x52f   :  { %v1047_v16 = vpop.f32.mrf.mxu1 }
 0x530   :  { %v662_v17 = vadd.f32 %v661_v13, %v642_v4  ;;  %v663_v18 = vadd.f32 %v661_v13, %v645_v3  ;;  %v700_v19 = vadd.f32 %v699_v14, %v654_v15  ;;  %v701_v20 = vadd.f32 %v699_v14, %v657_v12 }
 0x532   :  { %vm665_vm9 = vcmp.ge.f32.partialorder %v663_v18, 0.0  ;;  %v667_v21 = vmul.f32 0.2, %v663_v18  ;;  %vm664_vm10 = vcmp.ge.f32.partialorder %v662_v17, 0.0  ;;  %v666_v22 = vmul.f32 0.2, %v662_v17 }
 0x533   :  { %vm703_vm11 = vcmp.ge.f32.partialorder %v701_v20, 0.0  ;;  %v705_v23 = vmul.f32 0.2, %v701_v20  ;;  %vm702_vm12 = vcmp.ge.f32.partialorder %v700_v19, 0.0  ;;  %v704_v24 = vmul.f32 0.2, %v700_v19 }
 0x534   :  { %v669_v25 = vsel %vm665_vm9, %v663_v18, %v667_v21  ;;  %v668_v28 = vsel %vm664_vm10, %v662_v17, %v666_v22  ;;  %v902_v17 = vrot.slane %v1238_v7, %v468_v47 }
 0x535   :  { %v671_v26 = vadd.f32 %v669_v25, %v1181_v43  ;;  %v670_v27 = vadd.f32 %v668_v28, %v1179_v38  ;;  %v707_v29 = vsel %vm703_vm11, %v701_v20, %v705_v23  ;;  %v706_v30 = vsel %vm702_vm12, %v700_v19, %v704_v24 }
 0x536   :  { %v709_v33 = vadd.f32 %v707_v29, %v1181_v43  ;;  %v708_v34 = vadd.f32 %v706_v30, %v1179_v38 }
 0x537   :  { %v675_v31 = vsel %vm236_vm7, %v671_v26, -inf  ;;  %v672_v32 = vsel %vm236_vm7, %v670_v27, -inf }
 0x538   :  { %676 = vmax.xlane.f32.xlu1 %v675_v31  ;;  %673 = vmax.xlane.f32.xlu0 %v672_v32  ;;  %v713_v35 = vsel %vm236_vm7, %v709_v33, -inf  ;;  %v710_v36 = vsel %vm236_vm7, %v708_v34, -inf }
 0x53c   :  { %714 = vmax.xlane.f32.xlu1 %v713_v35  ;;  %711 = vmax.xlane.f32.xlu0 %v710_v36 }
 0x5c1   :  { %v677_v37 = vpop.xlane.xlu1 %676  ;;  %v674_v39 = vpop.xlane.xlu0 %673 }
 0x5c2   :  { %v679_v40 = vsub.f32 %v671_v26, %v677_v37  ;;  %v678_v41 = vsub.f32 %v670_v27, %v674_v39 }
 0x5c4   :  { %v682_v42 = vmul.f32 1.442695, %v679_v40  ;;  %v680_v44 = vmul.f32 1.442695, %v678_v41 }
 0x5c5   :  { %v715_v45 = vpop.xlane.xlu1 %714  ;;  %v712_v48 = vpop.xlane.xlu0 %711 }
 0x5c6   :  { %1083 = vpow2.f32 %v682_v42  ;;  %v717_v43 = vsub.f32 %v709_v33, %v715_v45  ;;  %v716_v49 = vsub.f32 %v708_v34, %v712_v48 }
 0x5c7   :  { %1085 = vpow2.f32 %v680_v44 }
 0x5c8   :  { %v720_v38 = vmul.f32 1.442695, %v717_v43  ;;  %v718_v50 = vmul.f32 1.442695, %v716_v49 }
 0x5ca   :  { %1087 = vpow2.f32 %v720_v38 }
 0x5cb   :  { %1089 = vpow2.f32 %v718_v50 }
 0x5d3   :  { %v1084_v51 = vpop.eup %1083 }
 0x5d4   :  { %v1086_v52 = vpop.eup %1085  ;;  %v687_v53 = vsel %vm236_vm7, %v1084_v51, 0.0 }
 0x5d5   :  { %688 = vadd.xlane.f32.xlu1 %v687_v53  ;;  %v684_v54 = vsel %vm236_vm7, %v1086_v52, 0.0 }
 0x5d6   :  { %685 = vadd.xlane.f32.xlu0 %v684_v54 }
 0x5d7   :  { %v1088_v55 = vpop.eup %1087 }
 0x5d8   :  { %v1090_v56 = vpop.eup %1089  ;;  %v725_v57 = vsel %vm236_vm7, %v1088_v55, 0.0 }
 0x5d9   :  { %726 = vadd.xlane.f32.xlu1 %v725_v57  ;;  %v722_v58 = vsel %vm236_vm7, %v1090_v56, 0.0 }
 0x5da   :  { %723 = vadd.xlane.f32.xlu0 %v722_v58 }
 0x65e   :  { %v689_v10 = vpop.xlane.xlu1 %688 }
 0x65f   :  { %v691_v59 = vmax.f32 %v689_v10, 1e-30  ;;  %v686_v61 = vpop.xlane.xlu0 %685 }
 0x660   :  { %v690_v63 = vmax.f32 %v686_v61, 1e-30 }
 0x661   :  { %1091 = vrcp.f32 %v691_v59 }
 0x662   :  { %1093 = vrcp.f32 %v690_v63  ;;  %v727_v0 = vpop.xlane.xlu1 %726 }
 0x663   :  { %v729_v9 = vmax.f32 %v727_v0, 1e-30  ;;  %v724_v11 = vpop.xlane.xlu0 %723 }
 0x664   :  { %v728_v1 = vmax.f32 %v724_v11, 1e-30 }
 0x665   :  { %1095 = vrcp.f32 %v729_v9 }
 0x666   :  { %1097 = vrcp.f32 %v728_v1 }
 0x66e   :  { %v1092_v2 = vpop.eup %1091 }
 0x66f   :  { %v1094_v6 = vpop.eup %1093  ;;  %v695_v3 = vmul.f32 %v1092_v2, %v1084_v51 }
 0x670   :  { %v693_v4 = vmul.f32 %v1094_v6, %v1086_v52 }
 0x672   :  { %v1096_v5 = vpop.eup %1095  ;;  %1052 = vmatprep.mubr.msk.f32.mxu1 %vm236_vm7, %v693_v4 }
 0x673   :  { %v1098_v12 = vpop.eup %1097  ;;  %1053 = vmatmul.mubr.msk.f32.vlgmr.msra.gmra.mxu1 %vm236_vm7, %v695_v3  ;;  %v733_v13 = vmul.f32 %v1096_v5, %v1088_v55 }
 0x674   :  { %1056 = vmatpush3.msra.mxu1 %v1246_v60  ;;  %v731_v14 = vmul.f32 %v1098_v12, %v1090_v56 }
 0x675   :  { %1057 = vmatprep.subr.mxu1 %v1251_v62 }
 0x676   :  { %1058 = vmatpush3.msra.mxu1 %v1251_v62  ;;  %1059 = vmatprep.mubr.msk.f32.mxu1 %vm236_vm7, %v731_v14 }
 0x677   :  { %1060 = vmatmul.mubr.msk.f32.vlgmr.msra.gmra.mxu1 %vm236_vm7, %v733_v13 }
 0x733   :  { %v1054_v15 = vpop.f32.mrf.mxu1 }
 0x735   :  { %v806_v16 = vpop.f32.mrf.mxu1 }
 0x737   :  { %v1061_v18 = vpop.f32.mrf.mxu1 }
 0x738   :  { %v898_v19 = vsel %vm896_vm13, %v1054_v15, %v1061_v18 }
 0x739   :  { %v904_v60 = vadd.f32 %v902_v17, %v898_v19  ;;  %v887_v20 = vpop.f32.mrf.mxu1 }
 0x73a   :  { %v897_v21 = vsel %vm896_vm13, %v806_v16, %v887_v20 }
 0x73b   :  { %v903_v22 = vadd.f32 %v902_v17, %v897_v21  ;;  %909 = vrot.lane.b32.xlu1 %v904_v60, %s1102_s2 }
 0x73d   :  { %907 = vrot.lane.b32.xlu0 %v903_v22, %s1102_s2 }
 0x7ad   :  { %v910_v24 = vpop.permute.xlu1 %909 }
 0x7ae   :  { %v914_v25 = vadd.f32 %v910_v24, %v904_v60 }
 0x7af   :  { %v908_v62 = vpop.permute.xlu0 %907 }
 0x7b0   :  { %v913_v23 = vadd.f32 %v908_v62, %v903_v22 }
 0x7b2   :  { %917 = vrot.lane.b32.xlu1 %v913_v23, %s1103_s16 }
 0x7b6   :  { %919 = vrot.lane.b32.xlu1 %v914_v25, %s1103_s16 }
 0x824   :  { %v918_v8 = vpop.permute.xlu1 %917 }
 0x825   :  { %v923_v46 = vsel %vm30_vm0, %v903_v22, %v918_v8 }
 0x826   :  { %v926_v47 = vsel %vm925_vm14, %v923_v46, 0.0 }
 0x827   :  { %928 = vst [vmem:[%s1308_s3] sm:$0xff] %v926_v47 }
 0x828   :  { %v920_v7 = vpop.permute.xlu1 %919 }
 0x829   :  { %v924_v28 = vsel %vm30_vm0, %v904_v60, %v920_v7 }
 0x82a   :  { %v927_v26 = vsel %vm925_vm14, %v924_v28, 0.0 }
 0x82b   :  { %929 = vst [vmem:[%s1308_s3 + $0x8] sm:$0xff] %v927_v26 }

</bundles_post_ra>
